<compile_context>
chip_gen: v7x
topology: tpu7x:2x2x1
jax: 0.10.0
libtpu: 0.0.40
codegen_flags: <defaults>
</compile_context>

<pallas_src>
import numpy as np

import jax
import jax.numpy as jnp
from jax.experimental import pallas as pl
from jax.experimental.pallas import tpu as pltpu

EMOTION_DIM = 8
HIDDEN1 = 64
HIDDEN2 = 128
PARAM_DIM = 16
OUT_W = 2 * PARAM_DIM          # 32: lanes 0:16 = music_params, 16:32 = scaled
LEAKY_SLOPE = 0.2              # nn.LeakyReLU(0.2) in the reference module
TB_CAP = 2048                  # batch-tile cap (per-tile VMEM ~1.5 MiB)

# music parameter table (order defines the parameter index, as in the module)
MUSIC_PARAMS = [
    ("tempo", 60.0, 180.0),
    ("key", 0.0, 11.0),
    ("mode", 0.0, 1.0),
    ("rhythm_density", 0.2, 0.9),
    ("note_duration", 0.1, 0.8),
    ("articulation", 0.2, 0.9),
    ("dynamics", 0.1, 0.9),
    ("timbre_brightness", 0.1, 0.9),
    ("harmonic_complexity", 0.1, 0.9),
    ("dissonance", 0.0, 0.7),
    ("reverb", 0.0, 0.8),
    ("stereo_width", 0.3, 1.0),
    ("instrumentation", 0.0, 5.0),
    ("melodic_range", 12.0, 36.0),
    ("bass_presence", 0.1, 0.9),
    ("density", 0.1, 0.9),
]
PARAM_NAMES = [p[0] for p in MUSIC_PARAMS]
PARAM_INDEX = {n: i for i, n in enumerate(PARAM_NAMES)}
ROUND_PARAMS = {"key", "instrumentation"}

EMOTION_NAMES = ["joy", "sadness", "anger", "fear",
                 "tenderness", "excitement", "calmness", "tension"]

EMOTION_MUSIC_RULES = {
    "joy":        {"tempo": 0.7, "mode": 0.2, "dissonance": 0.2, "dynamics": 0.7},
    "sadness":    {"tempo": 0.3, "mode": 0.8, "note_duration": 0.7, "reverb": 0.7},
    "anger":      {"tempo": 0.8, "dissonance": 0.7, "dynamics": 0.9, "articulation": 0.3},
    "fear":       {"dissonance": 0.6, "dynamics": 0.4, "stereo_width": 0.8},
    "tenderness": {"tempo": 0.4, "dynamics": 0.3, "articulation": 0.8, "harmonic_complexity": 0.4},
    "excitement": {"tempo": 0.8, "rhythm_density": 0.8, "dynamics": 0.8},
    "calmness":   {"tempo": 0.3, "dynamics": 0.3, "reverb": 0.6, "dissonance": 0.1},
    "tension":    {"harmonic_complexity": 0.7, "dissonance": 0.6, "dynamics": 0.5},
}

# ---------------------------------------------------------------------------
# Host-side constant tables (numpy). Packed into ONE [24, 32] slab that is
# passed to the kernel as a regular input (Pallas cannot close over array
# constants).
#   rows 0:8   rule mask,           duplicated to 32 lanes
#   rows 8:16  rule mask*value,     duplicated to 32 lanes
#   row  16    param min            (lanes 16:32 only; 0 elsewhere)
#   row  17    param range          (lanes 16:32 only; 1 elsewhere)
#   row  18    round mask           (lanes 16:32 only)
#   row  19    scale-select mask    (1 on lanes 16:32, 0 on lanes 0:16)
#   rows 20:24 zero padding (sublane alignment)
# ---------------------------------------------------------------------------
_RULE_MASK = np.zeros((EMOTION_DIM, PARAM_DIM), dtype=np.float32)
_RULE_VALUE = np.zeros((EMOTION_DIM, PARAM_DIM), dtype=np.float32)
for _i, _emo in enumerate(EMOTION_NAMES):
    for _pname, _v in EMOTION_MUSIC_RULES[_emo].items():
        _j = PARAM_INDEX[_pname]
        _RULE_MASK[_i, _j] = 1.0
        _RULE_VALUE[_i, _j] = float(_v)

_PMIN = np.array([p[1] for p in MUSIC_PARAMS], dtype=np.float32)
_PRANGE = np.array([p[2] - p[1] for p in MUSIC_PARAMS], dtype=np.float32)
_ROUNDM = np.array([1.0 if p[0] in ROUND_PARAMS else 0.0 for p in MUSIC_PARAMS],
                   dtype=np.float32)

_CONST_ROWS = 24
_ROW_MASK = 0
_ROW_MASKVAL = 8
_ROW_PMIN = 16
_ROW_PRANGE = 17
_ROW_ROUND = 18
_ROW_SEL = 19

_CONST_PACK_NP = np.zeros((_CONST_ROWS, OUT_W), dtype=np.float32)
_CONST_PACK_NP[_ROW_MASK:_ROW_MASK + EMOTION_DIM] = np.concatenate(
    [_RULE_MASK, _RULE_MASK], axis=1)
_CONST_PACK_NP[_ROW_MASKVAL:_ROW_MASKVAL + EMOTION_DIM] = np.concatenate(
    [_RULE_MASK * _RULE_VALUE, _RULE_MASK * _RULE_VALUE], axis=1)
_CONST_PACK_NP[_ROW_PMIN, PARAM_DIM:] = _PMIN
_CONST_PACK_NP[_ROW_PRANGE, :] = 1.0
_CONST_PACK_NP[_ROW_PRANGE, PARAM_DIM:] = _PRANGE
_CONST_PACK_NP[_ROW_ROUND, PARAM_DIM:] = _ROUNDM
_CONST_PACK_NP[_ROW_SEL, PARAM_DIM:] = 1.0


# ---------------------------------------------------------------------------
# Pallas kernel: full forward pass for one batch tile.
#   inputs : x [TB, 8], w1 [8, 64], w2 [64, 128], w3w [128, 32],
#            b_cat [3, 128], const [24, 32]
#   output : out [TB, 32]  (cols 0:16 = music_params, cols 16:32 = scaled)
# ---------------------------------------------------------------------------
def _mapper_kernel(x_ref, w1_ref, w2_ref, w3_ref, bcat_ref, const_ref, out_ref):
    x = x_ref[...]                                   # [TB, E]
    cst = const_ref[...]                             # [24, 32], loaded once

    b1 = bcat_ref[0:1, 0:HIDDEN1]                    # [1, 64]
    b2 = bcat_ref[1:2, :]                            # [1, 128]
    b3 = bcat_ref[2:3, 0:OUT_W]                      # [1, 32]

    # --- MLP: all three layers on the MXU (f32 operands, f32 accumulate).
    h1 = jnp.dot(x, w1_ref[...], preferred_element_type=jnp.float32) + b1
    h1 = jnp.maximum(h1, LEAKY_SLOPE * h1)           # LeakyReLU(0.2)
    h2 = jnp.dot(h1, w2_ref[...], preferred_element_type=jnp.float32) + b2
    h2 = jnp.maximum(h2, LEAKY_SLOPE * h2)
    mp = jnp.dot(h2, w3_ref[...], preferred_element_type=jnp.float32) + b3   # [TB, 32]

    # --- emotion-rule blend, closed form (equivalent to the sequential
    #     per-emotion blend in the module):
    #   mp_final = mp * prod_i (1 - f_i) + sum_i f_i * v_i * prod_{k>i} (1 - f_k)
    #   f_i = 0.7 * s_i * [s_i >= 0.2] * rule_mask_i
    eff = jnp.where(x >= 0.2, 0.7 * x, 0.0)          # [TB, E]
    suffix = jnp.ones_like(mp)
    acc = jnp.zeros_like(mp)
    for i in reversed(range(EMOTION_DIM)):
        e_i = eff[:, i:i + 1]                                        # [TB, 1]
        acc = acc + e_i * cst[_ROW_MASKVAL + i:_ROW_MASKVAL + i + 1, :] * suffix
        suffix = suffix * (1.0 - e_i * cst[_ROW_MASK + i:_ROW_MASK + i + 1, :])
    mp = mp * suffix + acc

    # --- scale to ranges on lanes 16:32 only: clamp, affine, round selected.
    v = jnp.clip(mp, 0.0, 1.0)
    scaled = cst[_ROW_PMIN:_ROW_PMIN + 1, :] + v * cst[_ROW_PRANGE:_ROW_PRANGE + 1, :]
    scaled = jnp.where(cst[_ROW_ROUND:_ROW_ROUND + 1, :] > 0.5,
                       jnp.round(scaled), scaled)

    # single lane-packed store (one writeback DMA).
    out_ref[...] = jnp.where(cst[_ROW_SEL:_ROW_SEL + 1, :] > 0.5, scaled, mp)


def _round_up(a, m):
    return ((a + m - 1) // m) * m


def _choose_tiling(batch):
    """Pick (TB, B_pad). Big tiles (low grid overhead); even tile count when
    more than one tile is needed so the parallel axis shards across both
    TensorCores on v7x."""
    b_pad = _round_up(max(batch, 1), 8)
    if b_pad <= TB_CAP:
        return b_pad, b_pad
    n_tiles = -(-b_pad // TB_CAP)
    if n_tiles % 2:
        n_tiles += 1
    tb = _round_up(-(-b_pad // n_tiles), 8)
    return tb, tb * n_tiles


def prepare_params(w1, b1, w2, b2, w3, b3):
    """One-time host-side packing (do NOT call per forward):
       f32 casts, widened W3 [128,32], packed biases [3,128], constant slab."""
    w1f = jnp.asarray(w1, jnp.float32)
    w2f = jnp.asarray(w2, jnp.float32)
    w3f = jnp.asarray(w3, jnp.float32)
    w3_wide = jnp.concatenate([w3f, w3f], axis=1)                 # [128, 32]

    b1f = jnp.asarray(b1, jnp.float32).reshape(-1)
    b2f = jnp.asarray(b2, jnp.float32).reshape(-1)
    b3f = jnp.asarray(b3, jnp.float32).reshape(-1)
    b_cat = jnp.zeros((3, HIDDEN2), jnp.float32)
    b_cat = b_cat.at[0, :HIDDEN1].set(b1f)
    b_cat = b_cat.at[1, :].set(b2f)
    b_cat = b_cat.at[2, :OUT_W].set(jnp.concatenate([b3f, b3f]))

    const_pack = jnp.asarray(_CONST_PACK_NP)                      # [24, 32]
    return w1f, w2f, w3_wide, b_cat, const_pack


@jax.jit
def emotion_to_music_forward(emotion_scores, w1f, w2f, w3_wide, b_cat, const_pack):
    """Returns (music_params [B, 16], scaled [B, 16]). Params must come from
    prepare_params()."""
    if emotion_scores.ndim == 1:
        emotion_scores = emotion_scores[None, :]
    B = emotion_scores.shape[0]

    TB, B_pad = _choose_tiling(B)
    grid_b = B_pad // TB

    x = emotion_scores.astype(jnp.float32)
    x = jnp.pad(x, ((0, B_pad - B), (0, 0)))

    flops_per_row = 2 * (EMOTION_DIM * HIDDEN1 + HIDDEN1 * HIDDEN2
                         + HIDDEN2 * OUT_W) + 1500
    bytes_accessed = 4 * (B_pad * EMOTION_DIM
                          + EMOTION_DIM * HIDDEN1 + HIDDEN1 * HIDDEN2
                          + HIDDEN2 * OUT_W + 3 * HIDDEN2 + _CONST_ROWS * OUT_W
                          + B_pad * OUT_W)

    out = pl.pallas_call(
        _mapper_kernel,
        out_shape=jax.ShapeDtypeStruct((B_pad, OUT_W), jnp.float32),
        grid=(grid_b,),
        in_specs=[
            pl.BlockSpec((TB, EMOTION_DIM), lambda i: (i, 0)),
            pl.BlockSpec((EMOTION_DIM, HIDDEN1), lambda i: (0, 0)),
            pl.BlockSpec((HIDDEN1, HIDDEN2), lambda i: (0, 0)),
            pl.BlockSpec((HIDDEN2, OUT_W), lambda i: (0, 0)),
            pl.BlockSpec((3, HIDDEN2), lambda i: (0, 0)),
            pl.BlockSpec((_CONST_ROWS, OUT_W), lambda i: (0, 0)),
        ],
        out_specs=pl.BlockSpec((TB, OUT_W), lambda i: (i, 0)),
        compiler_params=pltpu.CompilerParams(dimension_semantics=("parallel",)),
        cost_estimate=pl.CostEstimate(
            flops=B_pad * flops_per_row,
            transcendentals=0,
            bytes_accessed=bytes_accessed,
        ),
    )(x, w1f, w2f, w3_wide, b_cat, const_pack)

    mp = out[:B, :PARAM_DIM]
    scaled = out[:B, PARAM_DIM:]
    return mp, scaled


# ---------------------------------------------------------------------------
# Pure-JAX reference mirroring the *sequential* PyTorch semantics.
# ---------------------------------------------------------------------------
def _reference(emotion_scores, w1, b1, w2, b2, w3, b3):
    x = emotion_scores.astype(jnp.float32)
    if x.ndim == 1:
        x = x[None, :]
    h1 = x @ w1 + b1.reshape(1, -1)
    h1 = jnp.where(h1 > 0, h1, LEAKY_SLOPE * h1)
    h2 = h1 @ w2 + b2.reshape(1, -1)
    h2 = jnp.where(h2 > 0, h2, LEAKY_SLOPE * h2)
    mp = h2 @ w3 + b3.reshape(1, -1)
    rmask = jnp.asarray(_RULE_MASK)
    rval = jnp.asarray(_RULE_VALUE)
    for i in range(EMOTION_DIM):
        s = x[:, i:i + 1]
        bf = s * 0.7
        active = s >= 0.2
        has_rule = rmask[i:i + 1, :] > 0.5
        blended = (1.0 - bf) * mp + bf * rval[i:i + 1, :]
        mp = jnp.where(active & has_rule, blended, mp)
    v = jnp.clip(mp, 0.0, 1.0)
    scaled = jnp.asarray(_PMIN)[None, :] + v * jnp.asarray(_PRANGE)[None, :]
    scaled = jnp.where(jnp.asarray(_ROUNDM)[None, :] > 0.5, jnp.round(scaled), scaled)
    return mp, scaled


def init_params(key):
    """Deterministic parameter init (Linear weights stored as [in, out])."""
    ks = jax.random.split(key, 6)

    def linear(kw, kb, fan_in, fan_out):
        bound = 1.0 / jnp.sqrt(float(fan_in))
        w = jax.random.uniform(kw, (fan_in, fan_out), jnp.float32, -bound, bound)
        b = jax.random.uniform(kb, (1, fan_out), jnp.float32, -bound, bound)
        return w, b

    w1, b1 = linear(ks[0], ks[1], EMOTION_DIM, HIDDEN1)
    w2, b2 = linear(ks[2], ks[3], HIDDEN1, HIDDEN2)
    w3, b3 = linear(ks[4], ks[5], HIDDEN2, PARAM_DIM)
    return w1, b1, w2, b2, w3, b3


if __name__ == "__main__":
    key = jax.random.PRNGKey(0)
    k_in, k_par = jax.random.split(key)

    B = 2
    emotion_scores = jax.random.uniform(k_in, (B, EMOTION_DIM), jnp.float32)  # in [0,1)

    w1, b1, w2, b2, w3, b3 = init_params(k_par)
    prepared = prepare_params(w1, b1, w2, b2, w3, b3)   # one-time host packing

    mp, scaled = emotion_to_music_forward(emotion_scores, *prepared)
    jax.block_until_ready((mp, scaled))

    # package scaled params as a per-name dict, mirroring the PyTorch module output
    # TODO(synk): generate_musiclm_prompt (string building) is host-side Python, not a kernel.
    scaled_params = {name: scaled[:, i] for i, name in enumerate(PARAM_NAMES)}
    result = {"music_params": mp, "scaled_params": scaled_params}

    # sanity check against a pure-JAX reference with the original sequential blend
    mp_ref, scaled_ref = _reference(emotion_scores, w1, b1, w2, b2, w3, b3)
    assert jnp.allclose(mp, mp_ref, rtol=1e-4, atol=1e-4), (mp, mp_ref)
    assert jnp.allclose(scaled, scaled_ref, rtol=1e-4, atol=1e-4), (scaled, scaled_ref)

    print("KERNEL_OK")
</pallas_src>

<mosaic_0001>
module attributes {stable_mosaic.version = 11 : i64} {
  func.func @_mapper_kernel(%arg0: i32, %arg1: memref<8x8xf32, #tpu.memory_space<vmem>>, %arg2: memref<8x64xf32, #tpu.memory_space<vmem>>, %arg3: memref<64x128xf32, #tpu.memory_space<vmem>>, %arg4: memref<128x32xf32, #tpu.memory_space<vmem>>, %arg5: memref<3x128xf32, #tpu.memory_space<vmem>>, %arg6: memref<24x32xf32, #tpu.memory_space<vmem>>, %arg7: memref<8x32xf32, #tpu.memory_space<vmem>>) attributes {dimension_semantics = [#tpu.dimension_semantics<parallel>], iteration_bounds = array<i64: 1>, scalar_prefetch = 0 : i64, scratch_operands = 0 : i64, tpu.core_type = #tpu.core_type<tc>, window_params = [{transform_indices = @transform_0, window_bounds = array<i64: 8, 8>}, {pipeline_mode = #tpu.pipeline_mode<synchronous>, transform_indices = @transform_1, window_bounds = array<i64: 8, 64>}, {pipeline_mode = #tpu.pipeline_mode<synchronous>, transform_indices = @transform_2, window_bounds = array<i64: 64, 128>}, {pipeline_mode = #tpu.pipeline_mode<synchronous>, transform_indices = @transform_3, window_bounds = array<i64: 128, 32>}, {pipeline_mode = #tpu.pipeline_mode<synchronous>, transform_indices = @transform_4, window_bounds = array<i64: 3, 128>}, {pipeline_mode = #tpu.pipeline_mode<synchronous>, transform_indices = @transform_5, window_bounds = array<i64: 24, 32>}, {transform_indices = @transform_6, window_bounds = array<i64: 8, 32>}]} {
    %c0 = arith.constant 0 : index
    %c0_0 = arith.constant 0 : index
    %0 = vector.load %arg1[%c0, %c0_0] : memref<8x8xf32, #tpu.memory_space<vmem>>, vector<8x8xf32>
    %c0_1 = arith.constant 0 : index
    %c0_2 = arith.constant 0 : index
    %1 = vector.load %arg6[%c0_1, %c0_2] : memref<24x32xf32, #tpu.memory_space<vmem>>, vector<24x32xf32>
    %c0_3 = arith.constant 0 : index
    %c0_4 = arith.constant 0 : index
    %2 = vector.load %arg5[%c0_3, %c0_4] : memref<3x128xf32, #tpu.memory_space<vmem>>, vector<1x64xf32>
    %c1 = arith.constant 1 : index
    %c0_5 = arith.constant 0 : index
    %3 = vector.load %arg5[%c1, %c0_5] : memref<3x128xf32, #tpu.memory_space<vmem>>, vector<1x128xf32>
    %c2 = arith.constant 2 : index
    %c0_6 = arith.constant 0 : index
    %4 = vector.load %arg5[%c2, %c0_6] : memref<3x128xf32, #tpu.memory_space<vmem>>, vector<1x32xf32>
    %c0_7 = arith.constant 0 : index
    %c0_8 = arith.constant 0 : index
    %5 = vector.load %arg2[%c0_7, %c0_8] : memref<8x64xf32, #tpu.memory_space<vmem>>, vector<8x64xf32>
    %cst = arith.constant dense<0.000000e+00> : vector<8x64xf32>
    %6 = tpu.matmul %0, %5, %cst {dimension_numbers = #tpu.dot_dimension_numbers<[1], [0], [0], [1], [0, 0, 1, 1], [], []>} : vector<8x8xf32>, vector<8x64xf32>, vector<8x64xf32> -> vector<8x64xf32>
    %7 = vector.broadcast %2 : vector<1x64xf32> to vector<8x64xf32>
    %8 = arith.addf %6, %7 : vector<8x64xf32>
    %cst_9 = arith.constant 2.000000e-01 : f32
    %9 = vector.broadcast %cst_9 : f32 to vector<8x64xf32>
    %10 = arith.mulf %9, %8 : vector<8x64xf32>
    %11 = arith.maximumf %8, %10 : vector<8x64xf32>
    %c0_10 = arith.constant 0 : index
    %c0_11 = arith.constant 0 : index
    %12 = vector.load %arg3[%c0_10, %c0_11] : memref<64x128xf32, #tpu.memory_space<vmem>>, vector<64x128xf32>
    %cst_12 = arith.constant dense<0.000000e+00> : vector<8x128xf32>
    %13 = tpu.matmul %11, %12, %cst_12 {dimension_numbers = #tpu.dot_dimension_numbers<[1], [0], [0], [1], [0, 0, 1, 1], [], []>} : vector<8x64xf32>, vector<64x128xf32>, vector<8x128xf32> -> vector<8x128xf32>
    %14 = vector.broadcast %3 : vector<1x128xf32> to vector<8x128xf32>
    %15 = arith.addf %13, %14 : vector<8x128xf32>
    %cst_13 = arith.constant 2.000000e-01 : f32
    %16 = vector.broadcast %cst_13 : f32 to vector<8x128xf32>
    %17 = arith.mulf %16, %15 : vector<8x128xf32>
    %18 = arith.maximumf %15, %17 : vector<8x128xf32>
    %c0_14 = arith.constant 0 : index
    %c0_15 = arith.constant 0 : index
    %19 = vector.load %arg4[%c0_14, %c0_15] : memref<128x32xf32, #tpu.memory_space<vmem>>, vector<128x32xf32>
    %cst_16 = arith.constant dense<0.000000e+00> : vector<8x32xf32>
    %20 = tpu.matmul %18, %19, %cst_16 {dimension_numbers = #tpu.dot_dimension_numbers<[1], [0], [0], [1], [0, 0, 1, 1], [], []>} : vector<8x128xf32>, vector<128x32xf32>, vector<8x32xf32> -> vector<8x32xf32>
    %21 = vector.broadcast %4 : vector<1x32xf32> to vector<8x32xf32>
    %22 = arith.addf %20, %21 : vector<8x32xf32>
    %cst_17 = arith.constant 2.000000e-01 : f32
    %23 = vector.broadcast %cst_17 : f32 to vector<8x8xf32>
    %24 = arith.cmpf oge, %0, %23 : vector<8x8xf32>
    %cst_18 = arith.constant 0.699999988 : f32
    %25 = vector.broadcast %cst_18 : f32 to vector<8x8xf32>
    %26 = arith.mulf %25, %0 : vector<8x8xf32>
    %cst_19 = arith.constant 0.000000e+00 : f32
    %27 = vector.broadcast %cst_19 : f32 to vector<8x8xf32>
    %28 = arith.select %24, %26, %27 : vector<8x8xi1>, vector<8x8xf32>
    %cst_20 = arith.constant 1.000000e+00 : f32
    %29 = vector.broadcast %cst_20 : f32 to vector<8x32xf32>
    %cst_21 = arith.constant 0.000000e+00 : f32
    %30 = vector.broadcast %cst_21 : f32 to vector<8x32xf32>
    %31 = vector.extract_strided_slice %28 {offsets = [0, 7], sizes = [8, 1], strides = [1, 1]} : vector<8x8xf32> to vector<8x1xf32>
    %32 = vector.extract_strided_slice %1 {offsets = [15, 0], sizes = [1, 32], strides = [1, 1]} : vector<24x32xf32> to vector<1x32xf32>
    %33 = vector.broadcast %31 : vector<8x1xf32> to vector<8x32xf32>
    %34 = vector.broadcast %32 : vector<1x32xf32> to vector<8x32xf32>
    %35 = arith.mulf %33, %34 : vector<8x32xf32>
    %36 = arith.mulf %35, %29 : vector<8x32xf32>
    %37 = arith.addf %30, %36 : vector<8x32xf32>
    %38 = vector.extract_strided_slice %1 {offsets = [7, 0], sizes = [1, 32], strides = [1, 1]} : vector<24x32xf32> to vector<1x32xf32>
    %39 = vector.broadcast %31 : vector<8x1xf32> to vector<8x32xf32>
    %40 = vector.broadcast %38 : vector<1x32xf32> to vector<8x32xf32>
    %41 = arith.mulf %39, %40 : vector<8x32xf32>
    %cst_22 = arith.constant 1.000000e+00 : f32
    %42 = vector.broadcast %cst_22 : f32 to vector<8x32xf32>
    %43 = arith.subf %42, %41 : vector<8x32xf32>
    %44 = arith.mulf %29, %43 : vector<8x32xf32>
    %45 = vector.extract_strided_slice %28 {offsets = [0, 6], sizes = [8, 1], strides = [1, 1]} : vector<8x8xf32> to vector<8x1xf32>
    %46 = vector.extract_strided_slice %1 {offsets = [14, 0], sizes = [1, 32], strides = [1, 1]} : vector<24x32xf32> to vector<1x32xf32>
    %47 = vector.broadcast %45 : vector<8x1xf32> to vector<8x32xf32>
    %48 = vector.broadcast %46 : vector<1x32xf32> to vector<8x32xf32>
    %49 = arith.mulf %47, %48 : vector<8x32xf32>
    %50 = arith.mulf %49, %44 : vector<8x32xf32>
    %51 = arith.addf %37, %50 : vector<8x32xf32>
    %52 = vector.extract_strided_slice %1 {offsets = [6, 0], sizes = [1, 32], strides = [1, 1]} : vector<24x32xf32> to vector<1x32xf32>
    %53 = vector.broadcast %45 : vector<8x1xf32> to vector<8x32xf32>
    %54 = vector.broadcast %52 : vector<1x32xf32> to vector<8x32xf32>
    %55 = arith.mulf %53, %54 : vector<8x32xf32>
    %cst_23 = arith.constant 1.000000e+00 : f32
    %56 = vector.broadcast %cst_23 : f32 to vector<8x32xf32>
    %57 = arith.subf %56, %55 : vector<8x32xf32>
    %58 = arith.mulf %44, %57 : vector<8x32xf32>
    %59 = vector.extract_strided_slice %28 {offsets = [0, 5], sizes = [8, 1], strides = [1, 1]} : vector<8x8xf32> to vector<8x1xf32>
    %60 = vector.extract_strided_slice %1 {offsets = [13, 0], sizes = [1, 32], strides = [1, 1]} : vector<24x32xf32> to vector<1x32xf32>
    %61 = vector.broadcast %59 : vector<8x1xf32> to vector<8x32xf32>
    %62 = vector.broadcast %60 : vector<1x32xf32> to vector<8x32xf32>
    %63 = arith.mulf %61, %62 : vector<8x32xf32>
    %64 = arith.mulf %63, %58 : vector<8x32xf32>
    %65 = arith.addf %51, %64 : vector<8x32xf32>
    %66 = vector.extract_strided_slice %1 {offsets = [5, 0], sizes = [1, 32], strides = [1, 1]} : vector<24x32xf32> to vector<1x32xf32>
    %67 = vector.broadcast %59 : vector<8x1xf32> to vector<8x32xf32>
    %68 = vector.broadcast %66 : vector<1x32xf32> to vector<8x32xf32>
    %69 = arith.mulf %67, %68 : vector<8x32xf32>
    %cst_24 = arith.constant 1.000000e+00 : f32
    %70 = vector.broadcast %cst_24 : f32 to vector<8x32xf32>
    %71 = arith.subf %70, %69 : vector<8x32xf32>
    %72 = arith.mulf %58, %71 : vector<8x32xf32>
    %73 = vector.extract_strided_slice %28 {offsets = [0, 4], sizes = [8, 1], strides = [1, 1]} : vector<8x8xf32> to vector<8x1xf32>
    %74 = vector.extract_strided_slice %1 {offsets = [12, 0], sizes = [1, 32], strides = [1, 1]} : vector<24x32xf32> to vector<1x32xf32>
    %75 = vector.broadcast %73 : vector<8x1xf32> to vector<8x32xf32>
    %76 = vector.broadcast %74 : vector<1x32xf32> to vector<8x32xf32>
    %77 = arith.mulf %75, %76 : vector<8x32xf32>
    %78 = arith.mulf %77, %72 : vector<8x32xf32>
    %79 = arith.addf %65, %78 : vector<8x32xf32>
    %80 = vector.extract_strided_slice %1 {offsets = [4, 0], sizes = [1, 32], strides = [1, 1]} : vector<24x32xf32> to vector<1x32xf32>
    %81 = vector.broadcast %73 : vector<8x1xf32> to vector<8x32xf32>
    %82 = vector.broadcast %80 : vector<1x32xf32> to vector<8x32xf32>
    %83 = arith.mulf %81, %82 : vector<8x32xf32>
    %cst_25 = arith.constant 1.000000e+00 : f32
    %84 = vector.broadcast %cst_25 : f32 to vector<8x32xf32>
    %85 = arith.subf %84, %83 : vector<8x32xf32>
    %86 = arith.mulf %72, %85 : vector<8x32xf32>
    %87 = vector.extract_strided_slice %28 {offsets = [0, 3], sizes = [8, 1], strides = [1, 1]} : vector<8x8xf32> to vector<8x1xf32>
    %88 = vector.extract_strided_slice %1 {offsets = [11, 0], sizes = [1, 32], strides = [1, 1]} : vector<24x32xf32> to vector<1x32xf32>
    %89 = vector.broadcast %87 : vector<8x1xf32> to vector<8x32xf32>
    %90 = vector.broadcast %88 : vector<1x32xf32> to vector<8x32xf32>
    %91 = arith.mulf %89, %90 : vector<8x32xf32>
    %92 = arith.mulf %91, %86 : vector<8x32xf32>
    %93 = arith.addf %79, %92 : vector<8x32xf32>
    %94 = vector.extract_strided_slice %1 {offsets = [3, 0], sizes = [1, 32], strides = [1, 1]} : vector<24x32xf32> to vector<1x32xf32>
    %95 = vector.broadcast %87 : vector<8x1xf32> to vector<8x32xf32>
    %96 = vector.broadcast %94 : vector<1x32xf32> to vector<8x32xf32>
    %97 = arith.mulf %95, %96 : vector<8x32xf32>
    %cst_26 = arith.constant 1.000000e+00 : f32
    %98 = vector.broadcast %cst_26 : f32 to vector<8x32xf32>
    %99 = arith.subf %98, %97 : vector<8x32xf32>
    %100 = arith.mulf %86, %99 : vector<8x32xf32>
    %101 = vector.extract_strided_slice %28 {offsets = [0, 2], sizes = [8, 1], strides = [1, 1]} : vector<8x8xf32> to vector<8x1xf32>
    %102 = vector.extract_strided_slice %1 {offsets = [10, 0], sizes = [1, 32], strides = [1, 1]} : vector<24x32xf32> to vector<1x32xf32>
    %103 = vector.broadcast %101 : vector<8x1xf32> to vector<8x32xf32>
    %104 = vector.broadcast %102 : vector<1x32xf32> to vector<8x32xf32>
    %105 = arith.mulf %103, %104 : vector<8x32xf32>
    %106 = arith.mulf %105, %100 : vector<8x32xf32>
    %107 = arith.addf %93, %106 : vector<8x32xf32>
    %108 = vector.extract_strided_slice %1 {offsets = [2, 0], sizes = [1, 32], strides = [1, 1]} : vector<24x32xf32> to vector<1x32xf32>
    %109 = vector.broadcast %101 : vector<8x1xf32> to vector<8x32xf32>
    %110 = vector.broadcast %108 : vector<1x32xf32> to vector<8x32xf32>
    %111 = arith.mulf %109, %110 : vector<8x32xf32>
    %cst_27 = arith.constant 1.000000e+00 : f32
    %112 = vector.broadcast %cst_27 : f32 to vector<8x32xf32>
    %113 = arith.subf %112, %111 : vector<8x32xf32>
    %114 = arith.mulf %100, %113 : vector<8x32xf32>
    %115 = vector.extract_strided_slice %28 {offsets = [0, 1], sizes = [8, 1], strides = [1, 1]} : vector<8x8xf32> to vector<8x1xf32>
    %116 = vector.extract_strided_slice %1 {offsets = [9, 0], sizes = [1, 32], strides = [1, 1]} : vector<24x32xf32> to vector<1x32xf32>
    %117 = vector.broadcast %115 : vector<8x1xf32> to vector<8x32xf32>
    %118 = vector.broadcast %116 : vector<1x32xf32> to vector<8x32xf32>
    %119 = arith.mulf %117, %118 : vector<8x32xf32>
    %120 = arith.mulf %119, %114 : vector<8x32xf32>
    %121 = arith.addf %107, %120 : vector<8x32xf32>
    %122 = vector.extract_strided_slice %1 {offsets = [1, 0], sizes = [1, 32], strides = [1, 1]} : vector<24x32xf32> to vector<1x32xf32>
    %123 = vector.broadcast %115 : vector<8x1xf32> to vector<8x32xf32>
    %124 = vector.broadcast %122 : vector<1x32xf32> to vector<8x32xf32>
    %125 = arith.mulf %123, %124 : vector<8x32xf32>
    %cst_28 = arith.constant 1.000000e+00 : f32
    %126 = vector.broadcast %cst_28 : f32 to vector<8x32xf32>
    %127 = arith.subf %126, %125 : vector<8x32xf32>
    %128 = arith.mulf %114, %127 : vector<8x32xf32>
    %129 = vector.extract_strided_slice %28 {offsets = [0, 0], sizes = [8, 1], strides = [1, 1]} : vector<8x8xf32> to vector<8x1xf32>
    %130 = vector.extract_strided_slice %1 {offsets = [8, 0], sizes = [1, 32], strides = [1, 1]} : vector<24x32xf32> to vector<1x32xf32>
    %131 = vector.broadcast %129 : vector<8x1xf32> to vector<8x32xf32>
    %132 = vector.broadcast %130 : vector<1x32xf32> to vector<8x32xf32>
    %133 = arith.mulf %131, %132 : vector<8x32xf32>
    %134 = arith.mulf %133, %128 : vector<8x32xf32>
    %135 = arith.addf %121, %134 : vector<8x32xf32>
    %136 = vector.extract_strided_slice %1 {offsets = [0, 0], sizes = [1, 32], strides = [1, 1]} : vector<24x32xf32> to vector<1x32xf32>
    %137 = vector.broadcast %129 : vector<8x1xf32> to vector<8x32xf32>
    %138 = vector.broadcast %136 : vector<1x32xf32> to vector<8x32xf32>
    %139 = arith.mulf %137, %138 : vector<8x32xf32>
    %cst_29 = arith.constant 1.000000e+00 : f32
    %140 = vector.broadcast %cst_29 : f32 to vector<8x32xf32>
    %141 = arith.subf %140, %139 : vector<8x32xf32>
    %142 = arith.mulf %128, %141 : vector<8x32xf32>
    %143 = arith.mulf %22, %142 : vector<8x32xf32>
    %144 = arith.addf %143, %135 : vector<8x32xf32>
    %cst_30 = arith.constant 0.000000e+00 : f32
    %cst_31 = arith.constant 1.000000e+00 : f32
    %145 = vector.broadcast %cst_30 : f32 to vector<8x32xf32>
    %146 = arith.maximumf %145, %144 : vector<8x32xf32>
    %147 = vector.broadcast %cst_31 : f32 to vector<8x32xf32>
    %148 = arith.minimumf %147, %146 : vector<8x32xf32>
    %149 = vector.extract_strided_slice %1 {offsets = [16, 0], sizes = [1, 32], strides = [1, 1]} : vector<24x32xf32> to vector<1x32xf32>
    %150 = vector.extract_strided_slice %1 {offsets = [17, 0], sizes = [1, 32], strides = [1, 1]} : vector<24x32xf32> to vector<1x32xf32>
    %151 = vector.broadcast %150 : vector<1x32xf32> to vector<8x32xf32>
    %152 = arith.mulf %148, %151 : vector<8x32xf32>
    %153 = vector.broadcast %149 : vector<1x32xf32> to vector<8x32xf32>
    %154 = arith.addf %153, %152 : vector<8x32xf32>
    %155 = vector.extract_strided_slice %1 {offsets = [18, 0], sizes = [1, 32], strides = [1, 1]} : vector<24x32xf32> to vector<1x32xf32>
    %cst_32 = arith.constant 5.000000e-01 : f32
    %156 = vector.broadcast %cst_32 : f32 to vector<1x32xf32>
    %157 = arith.cmpf ogt, %155, %156 : vector<1x32xf32>
    %158 = math.roundeven %154 : vector<8x32xf32>
    %159 = vector.shape_cast %157 : vector<1x32xi1> to vector<1x32xi1>
    %160 = vector.broadcast %159 : vector<1x32xi1> to vector<8x32xi1>
    %161 = arith.select %160, %158, %154 : vector<8x32xi1>, vector<8x32xf32>
    %162 = vector.extract_strided_slice %1 {offsets = [19, 0], sizes = [1, 32], strides = [1, 1]} : vector<24x32xf32> to vector<1x32xf32>
    %cst_33 = arith.constant 5.000000e-01 : f32
    %163 = vector.broadcast %cst_33 : f32 to vector<1x32xf32>
    %164 = arith.cmpf ogt, %162, %163 : vector<1x32xf32>
    %165 = vector.shape_cast %164 : vector<1x32xi1> to vector<1x32xi1>
    %166 = vector.broadcast %165 : vector<1x32xi1> to vector<8x32xi1>
    %167 = arith.select %166, %161, %144 : vector<8x32xi1>, vector<8x32xf32>
    %c0_34 = arith.constant 0 : index
    %c0_35 = arith.constant 0 : index
    %168 = vector.load %arg7[%c0_34, %c0_35] : memref<8x32xf32, #tpu.memory_space<vmem>>, vector<8x32xf32>
    tpu.vector_store %arg7[%c0_34, %c0_35], %167 {strides = array<i32>} : memref<8x32xf32, #tpu.memory_space<vmem>>, vector<8x32xf32>,
    return
  }
  func.func @transform_0(%arg0: i32) -> (i32, i32) {
    %c0_i32 = arith.constant 0 : i32
    %c0_i32_0 = arith.constant 0 : i32
    return %arg0, %c0_i32 : i32, i32
  }
  func.func @transform_1(%arg0: i32) -> (i32, i32) {
    %c0_i32 = arith.constant 0 : i32
    %c0_i32_0 = arith.constant 0 : i32
    %c0_i32_1 = arith.constant 0 : i32
    return %c0_i32, %c0_i32_0 : i32, i32
  }
  func.func @transform_2(%arg0: i32) -> (i32, i32) {
    %c0_i32 = arith.constant 0 : i32
    %c0_i32_0 = arith.constant 0 : i32
    %c0_i32_1 = arith.constant 0 : i32
    return %c0_i32, %c0_i32_0 : i32, i32
  }
  func.func @transform_3(%arg0: i32) -> (i32, i32) {
    %c0_i32 = arith.constant 0 : i32
    %c0_i32_0 = arith.constant 0 : i32
    %c0_i32_1 = arith.constant 0 : i32
    return %c0_i32, %c0_i32_0 : i32, i32
  }
  func.func @transform_4(%arg0: i32) -> (i32, i32) {
    %c0_i32 = arith.constant 0 : i32
    %c0_i32_0 = arith.constant 0 : i32
    %c0_i32_1 = arith.constant 0 : i32
    return %c0_i32, %c0_i32_0 : i32, i32
  }
  func.func @transform_5(%arg0: i32) -> (i32, i32) {
    %c0_i32 = arith.constant 0 : i32
    %c0_i32_0 = arith.constant 0 : i32
    %c0_i32_1 = arith.constant 0 : i32
    return %c0_i32, %c0_i32_0 : i32, i32
  }
  func.func @transform_6(%arg0: i32) -> (i32, i32) {
    %c0_i32 = arith.constant 0 : i32
    %c0_i32_0 = arith.constant 0 : i32
    return %arg0, %c0_i32 : i32, i32
  }
}

</mosaic_0001>

<bundles_post_ra>
// kernel: emotion_to_music_forward.1
= control target key start
LH: loop header
LB: loop body
LE: loop exit
PB: predicated region body
PF: predicated region fallthrough
CT: control target
= control target key end

     0   :  { %vm35_vm0 = vcmask 64512   ;;  %v619_v0 = vmov 0.0   ;;  %vm620_vm1 = vmmov 0   ;;  %v621_v6 = vmov 0.0|0.0   ;;  %s814_s1 = inlined_call_operand.vmem [shape: f32[8,64], index: 1, kind: input, shape index: {}]   ;;  %s815_s0 = inlined_call_operand.vmem [shape: f32[8,8], index: 0, kind: input, shape index: {}]   ;;  %s816_s2 = inlined_call_operand.vmem [shape: f32[64,128], index: 2, kind: input, shape index: {}]   ;;  %s817_s3 = inlined_call_operand.vmem [shape: f32[128,32], index: 3, kind: input, shape index: {}]   ;;  %s818_s4 = inlined_call_operand.vmem [shape: f32[3,128], index: 4, kind: input, shape index: {}]   ;;  %s819_s5 = inlined_call_operand.vmem [shape: f32[24,32], index: 5, kind: input, shape index: {}]   ;;  %s820_s6 = inlined_call_operand.vmem [shape: f32[8,32], index: 6, kind: output, shape index: {}]  }
   0x1   :  { %503 = vmatprep.subr.mxu1 %v619_v0  ;;  %v30_v1 = vld [vmem:[%s814_s1] sm:$0xff]  ;;  %505 = vmatprep.mubr.msk.f32.mxu1 %vm620_vm1, %v619_v0  ;;  %v112_v4 = vld [vmem:[%s816_s2 + $0x8] sm:$0xff]  ;;  %v113_v5 = vld [vmem:[%s816_s2 + $0x10] sm:$0xff]  ;;  %vm123_vm2 = vcmask 523264   ;;  %v622_v48 = vmov 5   ;;  %v623_v49 = vmov 7   ;;  %v297_v62 = vlaneseq }
   0x2   :  { %v671_v2 = vld [vmem:[%s815_s0] sm:$0xff]  ;;  %504 = vmatpush3.msra.mxu1 %v30_v1  ;;  %574 = vmatprep.subr.bf16.mxu0 %v621_v6  ;;  %v114_v8 = vld [vmem:[%s816_s2 + $0x18] sm:$0xff]  ;;  %v116_v11 = vld [vmem:[%s816_s2 + $0x28] sm:$0xff]  ;;  %v624_v50 = vmov 4   ;;  %v625_v51 = vmov 6   ;;  %v626_v52 = vmov 3  }
   0x3   :  { %v111_v3 = vld [vmem:[%s816_s2] sm:$0xff]  ;;  %506 = vmatmul.mubr.msk.f32.vlgmr.msra.gmra.mrb[0].mxu1 %vm35_vm0, %v671_v2  ;;  %562 = vmatprep.subr.bf16.mxu1 %v621_v6  ;;  %v566_v9 = vpack.c.bf16 %v114_v8, %v113_v5  ;;  %v117_v13 = vld [vmem:[%s816_s2 + $0x30] sm:$0xff]  ;;  %v118_v14 = vld [vmem:[%s816_s2 + $0x38] sm:$0xff]  ;;  %v290_v45 = vmul.f32 0.7, %v671_v2  ;;  %v627_v53 = vmov 2  }
   0x4   :  { %v563_v7 = vpack.c.bf16 %v112_v4, %v111_v3  ;;  %524 = vmatprep.mubr.msk.f32.mxu1 %vm620_vm1, %v619_v0  ;;  %559 = vmatprep.mubr.msk.f32.mxu0 %vm620_vm1, %v619_v0  ;;  %v115_v10 = vld [vmem:[%s816_s2 + $0x20] sm:$0xff]  ;;  %v572_v15 = vpack.c.bf16 %v118_v14, %v117_v13  ;;  %v200_v17 = vld [vmem:[%s817_s3 + $0x8] sm:$0xff]  ;;  %v201_v18 = vld [vmem:[%s817_s3 + $0x10] sm:$0xff]  ;;  %vm289_vm3 = vcmp.ge.f32.partialorder %v671_v2, 0.2  ;;  %v628_v54 = vmov 1  }
   0x5   :  { %v569_v12 = vpack.c.bf16 %v116_v11, %v115_v10  ;;  %v199_v16 = vld [vmem:[%s817_s3] sm:$0xff]  ;;  %v202_v20 = vld [vmem:[%s817_s3 + $0x18] sm:$0xff]  ;;  %v204_v23 = vld [vmem:[%s817_s3 + $0x28] sm:$0xff]  ;;  %v291_v47 = vsel %vm289_vm3, %v290_v45, 0.0  ;;  %612 = vset.pattern.permute.xlu1 %v622_v48  ;;  %610 = vset.pattern.permute.xlu0 %v623_v49  ;;  %v629_v55 = vmov 0   ;;  %v298_v63 = vshrl.u32 %v297_v62, 7 }
   0x6   :  { %564 = vmatpush3.bf16.msra.mxu1 %v563_v7  ;;  %v575_v19 = vpack.c.bf16 %v200_v17, %v199_v16  ;;  %v578_v21 = vpack.c.bf16 %v202_v20, %v201_v18  ;;  %v203_v22 = vld [vmem:[%s817_s3 + $0x20] sm:$0xff]  ;;  %v205_v25 = vld [vmem:[%s817_s3 + $0x30] sm:$0xff]  ;;  %v206_v26 = vld [vmem:[%s817_s3 + $0x38] sm:$0xff]  ;;  %328 = vperm.xlu1 %612, %v291_v47   ;;  %vm464_vm7 = vcmask 261120  }
   0x7   :  { %565 = vmatprep.subr.bf16.mxu1 %v621_v6  ;;  %v581_v24 = vpack.c.bf16 %v204_v23, %v203_v22  ;;  %v584_v27 = vpack.c.bf16 %v206_v26, %v205_v25  ;;  %v207_v28 = vld [vmem:[%s817_s3 + $0x40] sm:$0xff]  ;;  %v208_v29 = vld [vmem:[%s817_s3 + $0x48] sm:$0xff]  ;;  %v209_v31 = vld [vmem:[%s817_s3 + $0x50] sm:$0xff]  ;;  %294 = vperm.xlu0 %610, %v291_v47   ;;  %v299_v1 = vsub.s32 7, %v298_v63  ;;  %v315_v2 = vsub.s32 6, %v298_v63 }
   0x8   :  { %576 = vmatpush3.bf16.msra.mxu0 %v575_v19  ;;  %v587_v30 = vpack.c.bf16 %v208_v29, %v207_v28  ;;  %v210_v32 = vld [vmem:[%s817_s3 + $0x58] sm:$0xff]  ;;  %v470_v34 = vld [vmem:[%s818_s4] ss:$0 sm:$0xff]  ;;  %v212_v41 = vld [vmem:[%s817_s3 + $0x68] sm:$0xff]  ;;  %v333_v5 = vsub.s32 5, %v298_v63  ;;  %v351_v10 = vsub.s32 4, %v298_v63 }
   0x9   :  { %577 = vmatprep.subr.bf16.mxu0 %v621_v6  ;;  %v590_v33 = vpack.c.bf16 %v210_v32, %v209_v31  ;;  %v211_v40 = vld [vmem:[%s817_s3 + $0x60] sm:$0xff]  ;;  %v213_v43 = vld [vmem:[%s817_s3 + $0x70] sm:$0xff]  ;;  %v214_v44 = vld [vmem:[%s817_s3 + $0x78] sm:$0xff] }
   0xa   :  { %567 = vmatpush3.bf16.msra.mxu1 %v566_v9  ;;  %v593_v42 = vpack.c.bf16 %v212_v41, %v211_v40  ;;  %v596_v46 = vpack.c.bf16 %v214_v44, %v213_v43  ;;  %613 = vset.pattern.permute.xlu1 %v624_v50  ;;  %v472_v56 = vld [vmem:[%s818_s4 + $0x1] ss:$0 sm:$0xff]  ;;  %v778_v7 = vld [vmem:[%s819_s5 + $0x8] sm:$0xff] }
   0xb   :  { %568 = vmatprep.subr.bf16.mxu1 %v621_v6  ;;  %611 = vset.pattern.permute.xlu0 %v625_v51  ;;  %v771_v3 = vld [vmem:[%s819_s5] sm:$0xff]  ;;  %v316_v13 = vrot.slane %v778_v7, %v315_v2  ;;  %v300_v16 = vrot.slane %v778_v7, %v299_v1  ;;  %v334_v17 = vrot.slane %v778_v7, %v333_v5 }
   0xc   :  { %579 = vmatpush3.bf16.msra.mxu0 %v578_v21  ;;  %346 = vperm.xlu1 %613, %v291_v47   ;;  %v306_v4 = vrot.slane %v771_v3, %v299_v1  ;;  %v359_v18 = vrot.slane %v771_v3, %v351_v10  ;;  %v352_v26 = vrot.slane %v778_v7, %v351_v10 }
   0xd   :  { %580 = vmatprep.subr.bf16.mxu0 %v621_v6  ;;  %310 = vperm.xlu0 %611, %v291_v47  }
   0xe   :  { %570 = vmatpush3.bf16.msra.mxu1 %v569_v12  ;;  %v341_v12 = vrot.slane %v771_v3, %v333_v5 }
   0xf   :  { %571 = vmatprep.subr.bf16.mxu1 %v621_v6 }
  0x10   :  { %582 = vmatpush3.bf16.msra.mxu0 %v581_v24  ;;  %614 = vset.pattern.permute.xlu1 %v626_v52  ;;  %v787_v24 = vsub.s32 2, %v298_v63 }
  0x11   :  { %583 = vmatprep.subr.bf16.mxu0 %v621_v6  ;;  %615 = vset.pattern.permute.xlu0 %v627_v53  ;;  %v423_v53 = vsub.s32 0, %v298_v63 }
  0x12   :  { %573 = vmatpush3.bf16.msra.mxu1 %v572_v15  ;;  %364 = vperm.xlu1 %614, %v291_v47   ;;  %v782_v15 = vsub.s32 3, %v298_v63  ;;  %v388_v45 = vrot.slane %v778_v7, %v787_v24 }
  0x13   :  { %382 = vperm.xlu0 %615, %v291_v47   ;;  %v431_v62 = vrot.slane %v771_v3, %v423_v53  ;;  %v424_v1 = vrot.slane %v778_v7, %v423_v53 }
  0x14   :  { %585 = vmatpush3.bf16.msra.mxu0 %v584_v27  ;;  %v377_v28 = vrot.slane %v771_v3, %v782_v15 }
  0x15   :  { %586 = vmatprep.subr.bf16.mxu0 %v621_v6 }
  0x16   :  { %616 = vset.pattern.permute.xlu1 %v628_v54 }
  0x17   :  { %618 = vset.pattern.permute.xlu0 %v629_v55  ;;  %400 = vperm.xlu1 %616, %v291_v47  }
  0x18   :  { %588 = vmatpush3.bf16.msra.mxu0 %v587_v30 }
  0x19   :  { %589 = vmatprep.subr.bf16.mxu0 %v621_v6 }
  0x1b   :  { %617 = vset.pattern.permute.xlu1 %v629_v55 }
  0x1c   :  { %591 = vmatpush3.bf16.msra.mxu0 %v590_v33  ;;  %418 = vperm.xlu1 %617, %v291_v47  }
  0x1d   :  { %592 = vmatprep.subr.bf16.mxu0 %v621_v6 }
  0x20   :  { %594 = vmatpush3.bf16.msra.mxu0 %v593_v42 }
  0x21   :  { %595 = vmatprep.subr.bf16.mxu0 %v621_v6  ;;  %v323_v6 = vrot.slane %v771_v3, %v315_v2 }
  0x24   :  { %597 = vmatpush3.bf16.msra.mxu0 %v596_v46 }
  0x85   :  { %v329_v8 = vpop.permute.xlu1 %328 }
  0x86   :  { %v295_v0 = vpop.permute.xlu0 %294  ;;  %v342_v21 = vmul.f32 %v341_v12, %v329_v8  ;;  %v335_v29 = vmul.f32 %v334_v17, %v329_v8 }
  0x87   :  { %v307_v11 = vmul.f32 %v306_v4, %v295_v0  ;;  %v301_v25 = vmul.f32 %v300_v16, %v295_v0 }
  0x88   :  { %v343_v30 = vsub.f32 1.0, %v342_v21 }
  0x89   :  { %v308_v20 = vsub.f32 1.0, %v307_v11 }
  0x8b   :  { %v347_v19 = vpop.permute.xlu1 %346 }
  0x8c   :  { %v311_v9 = vpop.permute.xlu0 %310  ;;  %v360_v27 = vmul.f32 %v359_v18, %v347_v19 }
  0x8d   :  { %v324_v14 = vmul.f32 %v323_v6, %v311_v9  ;;  %v317_v22 = vmul.f32 %v316_v13, %v311_v9 }
  0x8f   :  { %v325_v23 = vsub.f32 1.0, %v324_v14  ;;  %v318_v31 = vmul.f32 %v317_v22, %v308_v20  ;;  %v474_v14 = vld [vmem:[%s818_s4 + $0x2] ss:$0 sm:$0xff] }
  0x91   :  { %v326_v32 = vmul.f32 %v325_v23, %v308_v20  ;;  %v365_v33 = vpop.permute.xlu1 %364  ;;  %v26_v20 = vld [vmem:[%s819_s5 + $0x10] sm:$0xff] }
  0x92   :  { %v378_v42 = vmul.f32 %v377_v28, %v365_v33  ;;  %v383_v43 = vpop.permute.xlu0 %382  ;;  %vm449_vm4 = vcmp.gt.f32.partialorder %v26_v20, 0.5  ;;  %v447_v28 = vrot.slane %v26_v20, %v423_v53 }
  0x93   :  { %v336_v40 = vmul.f32 %v335_v29, %v326_v32  ;;  %v344_v41 = vmul.f32 %v343_v30, %v326_v32  ;;  %v389_v54 = vmul.f32 %v388_v45, %v383_v43 }
  0x94   :  { %v379_v51 = vsub.f32 1.0, %v378_v42 }
  0x96   :  { %v401_v52 = vpop.permute.xlu1 %400 }
  0x9b   :  { %v419_v2 = vpop.permute.xlu1 %418 }
  0x9c   :  { %v432_v9 = vmul.f32 %v431_v62, %v419_v2  ;;  %v425_v12 = vmul.f32 %v424_v1, %v419_v2 }
  0x9e   :  { %v433_v13 = vsub.f32 1.0, %v432_v9 }
  0xd6   :  { %v105_v35 = vpop.f32.mrb[0].mxu1 }
  0xd7   :  { %v106_v36 = vadd.f32 %v470_v34, %v105_v35  ;;  %v507_v37 = vpop.f32.mrb[1].mxu1  ;;  %v370_v34 = vrot.slane %v778_v7, %v782_v15  ;;  %v353_v35 = vmul.f32 %v352_v26, %v347_v19 }
  0xd8   :  { %v395_v37 = vrot.slane %v771_v3, %v787_v24 }
  0xd9   :  { %v109_v38 = vmul.f32 0.2, %v106_v36  ;;  %v371_v44 = vmul.f32 %v370_v34, %v365_v33  ;;  %v354_v49 = vmul.f32 %v353_v35, %v344_v41 }
  0xda   :  { %v396_v46 = vmul.f32 %v395_v37, %v383_v43 }
  0xdb   :  { %v110_v39 = vmax.f32 %v106_v36, %v109_v38  ;;  %v361_v36 = vsub.f32 1.0, %v360_v27  ;;  %v405_v38 = vsub.s32 1, %v298_v63 }
  0xdd   :  { %525 = vmatmul.mubr.msk.f32.vlgmr.msra.gmra.mrb[2].mxu1 %vm123_vm2, %v110_v39  ;;  %v319_v39 = vadd.f32 %v318_v31, %v301_v25  ;;  %v413_v47 = vrot.slane %v771_v3, %v405_v38  ;;  %v362_v50 = vmul.f32 %v361_v36, %v344_v41  ;;  %v451_v25 = vsel %vm449_vm4, 1, %v629_v55 }
  0xde   :  { %v442_v27 = vrot.slane %v26_v20, %v405_v38  ;;  %v455_v30 = vrot.slane %v451_v25, %v787_v24  ;;  %v461_v31 = vrot.slane %v451_v25, %v782_v15 }
  0xdf   :  { %v337_v48 = vadd.f32 %v336_v40, %v319_v39 }
  0xe0   :  { %vm456_vm5 = vcmp.eq.s32.totalorder %v455_v30, 1  ;;  %vm462_vm6 = vcmp.eq.s32.totalorder %v461_v31, 1 }
 0x1b0   :  { %v193_v57 = vpop.f32.mrb[2].mxu1 }
 0x1b1   :  { %v194_v58 = vadd.f32 %v472_v56, %v193_v57  ;;  %v526_v59 = vpop.f32.mrb[3].mxu1  ;;  %v397_v56 = vsub.f32 1.0, %v396_v46  ;;  %v406_v57 = vrot.slane %v778_v7, %v405_v38 }
 0x1b2   :  { %v372_v59 = vmul.f32 %v371_v44, %v362_v50 }
 0x1b3   :  { %v197_v60 = vmul.f32 0.2, %v194_v58  ;;  %v407_v0 = vmul.f32 %v406_v57, %v401_v52 }
 0x1b5   :  { %v198_v61 = vmax.f32 %v194_v58, %v197_v60  ;;  %v355_v58 = vadd.f32 %v354_v49, %v337_v48  ;;  %v380_v60 = vmul.f32 %v379_v51, %v362_v50 }
 0x1b7   :  { %560 = vmatmul.mubr.f32.vlgmr.msra.gmra.mrb[0].mxu0 %v198_v61  ;;  %v414_v61 = vmul.f32 %v413_v47, %v401_v52  ;;  %v373_v4 = vadd.f32 %v372_v59, %v355_v58  ;;  %v390_v5 = vmul.f32 %v389_v54, %v380_v60  ;;  %v398_v6 = vmul.f32 %v397_v56, %v380_v60 }
 0x1b9   :  { %v415_v8 = vsub.f32 1.0, %v414_v61  ;;  %v391_v63 = vadd.f32 %v390_v5, %v373_v4  ;;  %v408_v10 = vmul.f32 %v407_v0, %v398_v6 }
 0x1bb   :  { %v416_v11 = vmul.f32 %v415_v8, %v398_v6  ;;  %v409_v16 = vadd.f32 %v408_v10, %v391_v63 }
 0x1bd   :  { %v426_v3 = vmul.f32 %v425_v12, %v416_v11  ;;  %v434_v18 = vmul.f32 %v433_v13, %v416_v11 }
 0x1bf   :  { %v427_v21 = vadd.f32 %v426_v3, %v409_v16 }
 0x28a   :  { %v285_v17 = vpop.f32.mrb[0].mxu0 }
 0x28b   :  { %v286_v7 = vadd.f32 %v474_v14, %v285_v17  ;;  %v561_v19 = vpop.f32.mrb[1].mxu0 }
 0x28d   :  { %v435_v22 = vmul.f32 %v434_v18, %v286_v7 }
 0x28f   :  { %v436_v23 = vadd.f32 %v435_v22, %v427_v21 }
 0x291   :  { %v437_v26 = vmax.f32 %v436_v23, 0.0 }
 0x293   :  { %v438_v29 = vmin.f32 %v437_v26, 1.0 }
 0x295   :  { %v443_v32 = vmul.f32 %v442_v27, %v438_v29 }
 0x297   :  { %v448_v33 = vadd.f32 %v447_v28, %v443_v32 }
 0x299   :  { %v598_v34 = vround.rtne.f32 %v448_v33 }
 0x29b   :  { %v457_v35 = vsel %vm456_vm5, %v598_v34, %v448_v33 }
 0x29c   :  { %v463_v36 = vsel %vm462_vm6, %v457_v35, %v436_v23 }
 0x29d   :  { %465 = vst.msk [vmem:[%s820_s6] sm:$0xff] %vm464_vm7, %v463_v36 }

</bundles_post_ra>
